<compile_context>
chip_gen: v5e
topology: v5e:2x2
jax: 0.10.0
libtpu: 0.0.40
codegen_flags: <defaults>
</compile_context>

<pallas_src>
import functools

import jax
import jax.numpy as jnp
from jax.experimental import pallas as pl
from jax.experimental.pallas import tpu as pltpu


def _round_up(x, m):
    return (x + m - 1) // m * m


def sage_layer_kernel(a_ref, h_ref, w_self_ref, w_neigh_ref, b_ref, out_ref,
                      *, tm, apply_relu):
    """One dst-row tile of a SAGEConv('mean') layer.

    a_ref       : (TM, N_pad)           bf16  mean-normalized adjacency rows for this dst tile
    h_ref       : (N_pad, F_in_pad)     bf16  full node-feature matrix (src == dst node set)
    w_self_ref  : (F_in_pad, F_out_pad) bf16
    w_neigh_ref : (F_in_pad, F_out_pad) bf16
    b_ref       : (1, F_out_pad)        f32   bias
    out_ref     : (TM, F_out_pad)
    """
    i = pl.program_id(0)

    # Mean neighbor aggregation on the MXU (bf16 inputs, f32 accumulation).
    h_neigh = jnp.dot(a_ref[...], h_ref[...], preferred_element_type=jnp.float32)

    # Destination-node features are rows [i*TM, (i+1)*TM) of the already-resident feature
    # block -- a VMEM view, no separate DMA and no wrapper-side slice needed.
    h_dst = h_ref[pl.ds(pl.multiple_of(i * tm, tm), tm), :]

    # Two MXU passes, f32 accumulation, no intermediate concat copy.
    out = jnp.dot(h_dst, w_self_ref[...], preferred_element_type=jnp.float32)
    out += jnp.dot(h_neigh.astype(jnp.bfloat16), w_neigh_ref[...],
                   preferred_element_type=jnp.float32)
    out += b_ref[...]
    if apply_relu:
        out = jnp.maximum(out, 0.0)
    out_ref[...] = out.astype(out_ref.dtype)


def sage_conv_layer(a, h, w_self, w_neigh, b, *, apply_relu, out_dtype, tm):
    """SAGEConv('mean') on padded, bf16 inputs.  Grid tiles the destination rows."""
    n_pad = a.shape[0]
    f_in = h.shape[1]
    f_out = w_self.shape[1]
    kernel = functools.partial(sage_layer_kernel, tm=tm, apply_relu=apply_relu)
    return pl.pallas_call(
        kernel,
        out_shape=jax.ShapeDtypeStruct((n_pad, f_out), out_dtype),
        grid_spec=pltpu.PrefetchScalarGridSpec(
            num_scalar_prefetch=0,
            grid=(n_pad // tm,),
            in_specs=[
                pl.BlockSpec((tm, n_pad), lambda i: (i, 0)),      # A rows of this dst tile
                pl.BlockSpec((n_pad, f_in), lambda i: (0, 0)),    # full H (index-invariant)
                pl.BlockSpec((f_in, f_out), lambda i: (0, 0)),    # W_self
                pl.BlockSpec((f_in, f_out), lambda i: (0, 0)),    # W_neigh
                pl.BlockSpec((1, f_out), lambda i: (0, 0)),       # bias
            ],
            out_specs=pl.BlockSpec((tm, f_out), lambda i: (i, 0)),  # lane-dense output tile
        ),
        compiler_params=pltpu.CompilerParams(
            dimension_semantics=("parallel",),  # independent dst tiles -> 2 TCs on v7x
        ),
    )(a, h, w_self, w_neigh, b)


def sage_forward(params, a_norm, x, *, tm=128):
    """SAGE.forward: h = conv1(g, x); h = relu(h); h = conv2(g, h)."""
    n = x.shape[0]
    f_in = x.shape[1]
    f_hid = params["w_self1"].shape[1]
    f_out = params["w_self2"].shape[1]

    n_pad = _round_up(n, tm)
    f_in_p = _round_up(f_in, 128)
    f_hid_p = _round_up(f_hid, 128)
    f_out_p = _round_up(f_out, 128)

    def pad2(m, r, c, dtype):
        return jnp.pad(m, ((0, r - m.shape[0]), (0, c - m.shape[1]))).astype(dtype)

    # Zero padding is exact: padded feature columns carry zero weights, and padded node rows
    # correspond to all-zero adjacency columns, so they never contaminate real outputs
    # (which are sliced off at the end).
    a_p = pad2(a_norm, n_pad, n_pad, jnp.bfloat16)
    x_p = pad2(x, n_pad, f_in_p, jnp.bfloat16)

    ws1 = pad2(params["w_self1"], f_in_p, f_hid_p, jnp.bfloat16)
    wn1 = pad2(params["w_neigh1"], f_in_p, f_hid_p, jnp.bfloat16)
    b1 = jnp.pad(params["b1"], (0, f_hid_p - f_hid)).astype(jnp.float32)[None, :]
    ws2 = pad2(params["w_self2"], f_hid_p, f_out_p, jnp.bfloat16)
    wn2 = pad2(params["w_neigh2"], f_hid_p, f_out_p, jnp.bfloat16)
    b2 = jnp.pad(params["b2"], (0, f_out_p - f_out)).astype(jnp.float32)[None, :]

    # conv1 + ReLU fused; output stays bf16 & lane-dense so conv2 consumes it directly.
    h1 = sage_conv_layer(a_p, x_p, ws1, wn1, b1, apply_relu=True,
                         out_dtype=jnp.bfloat16, tm=tm)
    out = sage_conv_layer(a_p, h1, ws2, wn2, b2, apply_relu=False,
                          out_dtype=jnp.float32, tm=tm)
    return out[:n, :f_out]


def _reference(params, a_norm, x):
    """Plain-JAX (f32) reference of the same semantics."""
    h = x @ params["w_self1"] + (a_norm @ x) @ params["w_neigh1"] + params["b1"]
    h = jnp.maximum(h, 0.0)
    return h @ params["w_self2"] + (a_norm @ h) @ params["w_neigh2"] + params["b2"]


def _mean_normalize(adj):
    deg = adj.sum(axis=-1, keepdims=True)
    return adj / jnp.maximum(deg, 1.0)


if __name__ == "__main__":
    in_feat, hid_feat, out_feat = 16, 32, 8
    n_nodes = 64

    key = jax.random.PRNGKey(0)
    k0, k1, k2, k3, k4, k5 = jax.random.split(key, 6)

    x = jax.random.normal(k0, (n_nodes, in_feat), jnp.float32)
    adj = jax.random.bernoulli(k1, 0.15, (n_nodes, n_nodes)).astype(jnp.float32)
    a_norm = _mean_normalize(adj)

    s1 = 1.0 / jnp.sqrt(jnp.float32(in_feat))
    s2 = 1.0 / jnp.sqrt(jnp.float32(hid_feat))
    params = {
        "w_self1":  s1 * jax.random.normal(k2, (in_feat, hid_feat), jnp.float32),
        "w_neigh1": s1 * jax.random.normal(k3, (in_feat, hid_feat), jnp.float32),
        "b1":       jnp.zeros((hid_feat,), jnp.float32),
        "w_self2":  s2 * jax.random.normal(k4, (hid_feat, out_feat), jnp.float32),
        "w_neigh2": s2 * jax.random.normal(k5, (hid_feat, out_feat), jnp.float32),
        "b2":       jnp.zeros((out_feat,), jnp.float32),
    }

    out = jax.block_until_ready(sage_forward(params, a_norm, x))
    ref = _reference(params, a_norm, x)

    assert out.shape == (n_nodes, out_feat)
    # bf16 inputs with f32 accumulation -> ~1e-2-scale rounding vs the f32 reference.
    assert jnp.allclose(out, ref, atol=1e-1, rtol=5e-2), float(jnp.max(jnp.abs(out - ref)))

    print("KERNEL_OK")
</pallas_src>

<mosaic_0001>
module attributes {stable_mosaic.version = 11 : i64} {
  func.func @sage_layer_kernel(%arg0: i32, %arg1: memref<128x128xbf16, #tpu.memory_space<vmem>>, %arg2: memref<128x128xbf16, #tpu.memory_space<vmem>>, %arg3: memref<128x128xbf16, #tpu.memory_space<vmem>>, %arg4: memref<128x128xbf16, #tpu.memory_space<vmem>>, %arg5: memref<1x128xf32, #tpu.memory_space<vmem>>, %arg6: memref<128x128xbf16, #tpu.memory_space<vmem>>) attributes {dimension_semantics = [#tpu.dimension_semantics<parallel>], iteration_bounds = array<i64: 1>, scalar_prefetch = 0 : i64, scratch_operands = 0 : i64, tpu.core_type = #tpu.core_type<tc>, window_params = [{transform_indices = @transform_0, window_bounds = array<i64: 128, 128>}, {pipeline_mode = #tpu.pipeline_mode<synchronous>, transform_indices = @transform_1, window_bounds = array<i64: 128, 128>}, {pipeline_mode = #tpu.pipeline_mode<synchronous>, transform_indices = @transform_2, window_bounds = array<i64: 128, 128>}, {pipeline_mode = #tpu.pipeline_mode<synchronous>, transform_indices = @transform_3, window_bounds = array<i64: 128, 128>}, {pipeline_mode = #tpu.pipeline_mode<synchronous>, transform_indices = @transform_4, window_bounds = array<i64: 1, 128>}, {transform_indices = @transform_5, window_bounds = array<i64: 128, 128>}]} {
    %c0 = arith.constant 0 : index
    %c0_0 = arith.constant 0 : index
    %0 = vector.load %arg1[%c0, %c0_0] : memref<128x128xbf16, #tpu.memory_space<vmem>>, vector<128x128xbf16>
    %c0_1 = arith.constant 0 : index
    %c0_2 = arith.constant 0 : index
    %1 = vector.load %arg2[%c0_1, %c0_2] : memref<128x128xbf16, #tpu.memory_space<vmem>>, vector<128x128xbf16>
    %cst = arith.constant dense<0.000000e+00> : vector<128x128xf32>
    %2 = tpu.matmul %0, %1, %cst {dimension_numbers = #tpu.dot_dimension_numbers<[1], [0], [0], [1], [0, 0, 1, 1], [], []>} : vector<128x128xbf16>, vector<128x128xbf16>, vector<128x128xf32> -> vector<128x128xf32>
    %c128_i32 = arith.constant 128 : i32
    %3 = arith.muli %arg0, %c128_i32 : i32
    %4 = tpu.assume_multiple %3, 128 : i32
    %5 = arith.index_cast %4 : i32 to index
    %c0_3 = arith.constant 0 : index
    %6 = vector.load %arg2[%5, %c0_3] : memref<128x128xbf16, #tpu.memory_space<vmem>>, vector<128x128xbf16>
    %c0_4 = arith.constant 0 : index
    %c0_5 = arith.constant 0 : index
    %7 = vector.load %arg3[%c0_4, %c0_5] : memref<128x128xbf16, #tpu.memory_space<vmem>>, vector<128x128xbf16>
    %cst_6 = arith.constant dense<0.000000e+00> : vector<128x128xf32>
    %8 = tpu.matmul %6, %7, %cst_6 {dimension_numbers = #tpu.dot_dimension_numbers<[1], [0], [0], [1], [0, 0, 1, 1], [], []>} : vector<128x128xbf16>, vector<128x128xbf16>, vector<128x128xf32> -> vector<128x128xf32>
    %9 = arith.truncf %2 : vector<128x128xf32> to vector<128x128xbf16>
    %c0_7 = arith.constant 0 : index
    %c0_8 = arith.constant 0 : index
    %10 = vector.load %arg4[%c0_7, %c0_8] : memref<128x128xbf16, #tpu.memory_space<vmem>>, vector<128x128xbf16>
    %cst_9 = arith.constant dense<0.000000e+00> : vector<128x128xf32>
    %11 = tpu.matmul %9, %10, %cst_9 {dimension_numbers = #tpu.dot_dimension_numbers<[1], [0], [0], [1], [0, 0, 1, 1], [], []>} : vector<128x128xbf16>, vector<128x128xbf16>, vector<128x128xf32> -> vector<128x128xf32>
    %12 = arith.addf %8, %11 : vector<128x128xf32>
    %c0_10 = arith.constant 0 : index
    %c0_11 = arith.constant 0 : index
    %13 = vector.load %arg5[%c0_10, %c0_11] : memref<1x128xf32, #tpu.memory_space<vmem>>, vector<1x128xf32>
    %14 = vector.broadcast %13 : vector<1x128xf32> to vector<128x128xf32>
    %15 = arith.addf %12, %14 : vector<128x128xf32>
    %cst_12 = arith.constant 0.000000e+00 : f32
    %16 = vector.broadcast %cst_12 : f32 to vector<128x128xf32>
    %17 = arith.maximumf %15, %16 : vector<128x128xf32>
    %18 = arith.truncf %17 : vector<128x128xf32> to vector<128x128xbf16>
    %c0_13 = arith.constant 0 : index
    %c0_14 = arith.constant 0 : index
    %19 = vector.load %arg6[%c0_13, %c0_14] : memref<128x128xbf16, #tpu.memory_space<vmem>>, vector<128x128xbf16>
    tpu.vector_store %arg6[%c0_13, %c0_14], %18 {strides = array<i32>} : memref<128x128xbf16, #tpu.memory_space<vmem>>, vector<128x128xbf16>,
    return
  }
  func.func @transform_0(%arg0: i32) -> (i32, i32) {
    %c0_i32 = arith.constant 0 : i32
    %c0_i32_0 = arith.constant 0 : i32
    return %arg0, %c0_i32 : i32, i32
  }
  func.func @transform_1(%arg0: i32) -> (i32, i32) {
    %c0_i32 = arith.constant 0 : i32
    %c0_i32_0 = arith.constant 0 : i32
    %c0_i32_1 = arith.constant 0 : i32
    return %c0_i32, %c0_i32_0 : i32, i32
  }
  func.func @transform_2(%arg0: i32) -> (i32, i32) {
    %c0_i32 = arith.constant 0 : i32
    %c0_i32_0 = arith.constant 0 : i32
    %c0_i32_1 = arith.constant 0 : i32
    return %c0_i32, %c0_i32_0 : i32, i32
  }
  func.func @transform_3(%arg0: i32) -> (i32, i32) {
    %c0_i32 = arith.constant 0 : i32
    %c0_i32_0 = arith.constant 0 : i32
    %c0_i32_1 = arith.constant 0 : i32
    return %c0_i32, %c0_i32_0 : i32, i32
  }
  func.func @transform_4(%arg0: i32) -> (i32, i32) {
    %c0_i32 = arith.constant 0 : i32
    %c0_i32_0 = arith.constant 0 : i32
    %c0_i32_1 = arith.constant 0 : i32
    return %c0_i32, %c0_i32_0 : i32, i32
  }
  func.func @transform_5(%arg0: i32) -> (i32, i32) {
    %c0_i32 = arith.constant 0 : i32
    %c0_i32_0 = arith.constant 0 : i32
    return %arg0, %c0_i32 : i32, i32
  }
}

</mosaic_0001>

<bundles_post_ra>
// kernel: tpu_custom_call.1
= control target key start
LH: loop header
LB: loop body
LE: loop exit
PB: predicated region body
PF: predicated region fallthrough
CT: control target
= control target key end

     0   :  { %10 = vsyncpa [#allocation3], 0  ;;  %s1150_s0 = inlined_call_operand.hbm [shape: bf16[128,128], index: 0, kind: input, shape index: {}]   ;;  %s1151_s1 = inlined_call_operand.hbm [shape: bf16[128,128], index: 1, kind: input, shape index: {}]   ;;  %s1152_s2 = inlined_call_operand.hbm [shape: bf16[128,128], index: 2, kind: input, shape index: {}]   ;;  %s1153_s3 = inlined_call_operand.hbm [shape: bf16[128,128], index: 3, kind: input, shape index: {}]   ;;  %s1154_s4 = inlined_call_operand.vmem [shape: f32[1,128], index: 4, kind: input, shape index: {}]   ;;  %s1155_s5 = inlined_call_operand.hbm [shape: bf16[128,128], index: 5, kind: output, shape index: {}]  }
   0x1   :  { %11 = vsyncpa [#allocation6], 0 }
   0x2   :  { %12 = vsyncpa [#allocation9], 0 }
   0x3   :  { %13 = vsyncpa [#allocation4], 0  ;;  %s31_s20 = sshll.u32 %s1151_s1, 4  ;;  %s1062_s21 = smov [#allocation5]   ;;  %s32_s20 = int_to_ptr.hbm [resolvable:$true] %s31_s20 }
   0x4   :  { %s33_s22 = sshll.u32 %s1062_s21, 4  ;;  %s18_s25 = sshll.u32 %s1150_s0, 4  ;;  %s34_s22 = int_to_ptr.vmem [resolvable:$true] %s33_s22  ;;  %s19_s25 = int_to_ptr.hbm [resolvable:$true] %s18_s25 }
   0x5   :  { %s1063_s26 = smov 64   ;;  %s1064_s27 = smov 4  }
   0x6   :  { %39 = dma.hbm_to_vmem [thread:$0]  %s32_s20, 1024, %s34_s22, [#allocation6], %s1063_s26, %s1063_s26, %s1064_s27  }
   0x7   :  { %s1065_s28 = smov [#allocation2]   ;;  %s44_s1 = sshll.u32 %s1152_s2, 4  ;;  %s45_s1 = int_to_ptr.hbm [resolvable:$true] %s44_s1 }
   0x8   :  { %s20_s29 = sshll.u32 %s1065_s28, 4  ;;  %s57_s8 = sshll.u32 %s1153_s3, 4  ;;  %s21_s29 = int_to_ptr.vmem [resolvable:$true] %s20_s29  ;;  %s58_s8 = int_to_ptr.hbm [resolvable:$true] %s57_s8 }
   0x9   :  { %26 = dma.hbm_to_vmem [thread:$0]  %s19_s25, 1024, %s21_s29, [#allocation3], %s1063_s26, %s1063_s26, %s1064_s27  }
   0xa   :  { %s1066_s9 = smov [#allocation7]   ;;  %s1067_s11 = smov [#allocation8]  }
   0xb   :  { %s46_s10 = sshll.u32 %s1066_s9, 4  ;;  %s59_s2 = sshll.u32 %s1067_s11, 4  ;;  %s47_s10 = int_to_ptr.vmem [resolvable:$true] %s46_s10  ;;  %s60_s2 = int_to_ptr.vmem [resolvable:$true] %s59_s2 }
   0xc   :  { %52 = dma.hbm_to_vmem [thread:$0]  %s45_s1, 1024, %s47_s10, [#allocation6], %s1063_s26, %s1063_s26, %s1064_s27  }
   0xd   :  { %65 = dma.hbm_to_vmem [thread:$0]  %s58_s8, 1024, %s60_s2, [#allocation9], %s1063_s26, %s1063_s26, %s1064_s27  }
   0xe   :  { %1054 = dma.done.wait [#allocation3], 1024  }
   0xf   :  { %1055 = vsyncadd [#allocation3], 4294966272 }
  0x10   :  { %1056 = dma.done.wait [#allocation6], 2048  }
  0x11   :  { %1057 = vsyncadd [#allocation6], 4294965248 }
  0x12   :  { %1058 = dma.done.wait [#allocation9], 1024  }
  0x13   :  { %1059 = vsyncadd [#allocation9], 4294966272  ;;  %v830_v0 = vld [vmem:[#allocation5 + $0x38] sm:$0xff]  ;;  %v829_v1 = vld [vmem:[#allocation5 + $0x30] sm:$0xff]  ;;  %s638_s16 = sshll.u32 %s1155_s5, 4  ;;  %s639_s16 = int_to_ptr.hbm [resolvable:$true] %s638_s16 }
  0x14   :  { %212 = vmatpush.bf16.msra.mxu0 %v830_v0  ;;  %902 = vmatpush.bf16.msra.mxu3 %v830_v0  ;;  %v828_v2 = vld [vmem:[#allocation5 + $0x28] sm:$0xff]  ;;  %v827_v3 = vld [vmem:[#allocation5 + $0x20] sm:$0xff]  ;;  %v826_v4 = vld [vmem:[#allocation5 + $0x18] sm:$0xff] }
  0x15   :  { %v825_v5 = vld [vmem:[#allocation5 + $0x10] sm:$0xff]  ;;  %v824_v6 = vld [vmem:[#allocation5 + $0x8] sm:$0xff]  ;;  %v823_v7 = vld [vmem:[#allocation5] sm:$0xff] }
  0x16   :  { %v815_v8 = vld [vmem:[#allocation2] sm:$0xff]  ;;  %v821_v9 = vld [vmem:[#allocation2 + $0x30] sm:$0xff]  ;;  %v816_v10 = vld [vmem:[#allocation2 + $0x8] sm:$0xff] }
  0x17   :  { %v822_v11 = vld [vmem:[#allocation2 + $0x38] sm:$0xff]  ;;  %v817_v12 = vld [vmem:[#allocation2 + $0x10] sm:$0xff]  ;;  %v844_v18 = vld [vmem:[#allocation7 + $0x28] sm:$0xff] }
  0x18   :  { %213 = vmatpush.bf16.msra.mxu0 %v829_v1  ;;  %903 = vmatpush.bf16.msra.mxu3 %v829_v1  ;;  %v818_v13 = vld [vmem:[#allocation2 + $0x18] sm:$0xff]  ;;  %v845_v16 = vld [vmem:[#allocation7 + $0x30] sm:$0xff]  ;;  %v852_v19 = vld [vmem:[#allocation8 + $0x28] sm:$0xff] }
  0x19   :  { %v846_v14 = vld [vmem:[#allocation7 + $0x38] sm:$0xff]  ;;  %v853_v17 = vld [vmem:[#allocation8 + $0x30] sm:$0xff]  ;;  %v843_v20 = vld [vmem:[#allocation7 + $0x20] sm:$0xff] }
  0x1a   :  { %v854_v15 = vld [vmem:[#allocation8 + $0x38] sm:$0xff]  ;;  %515 = vmatpush.bf16.msra.mxu2 %v846_v14  ;;  %v851_v21 = vld [vmem:[#allocation8 + $0x20] sm:$0xff]  ;;  %v841_v25 = vld [vmem:[#allocation7 + $0x10] sm:$0xff] }
  0x1b   :  { %370 = vmatpush.bf16.msra.mxu1 %v854_v15  ;;  %v819_v22 = vld [vmem:[#allocation2 + $0x20] sm:$0xff]  ;;  %v842_v23 = vld [vmem:[#allocation7 + $0x18] sm:$0xff]  ;;  %v840_v26 = vld [vmem:[#allocation7 + $0x8] sm:$0xff] }
  0x1c   :  { %214 = vmatpush.bf16.msra.mxu0 %v828_v2  ;;  %904 = vmatpush.bf16.msra.mxu3 %v828_v2  ;;  %v850_v24 = vld [vmem:[#allocation8 + $0x18] sm:$0xff]  ;;  %v839_v27 = vld [vmem:[#allocation7] sm:$0xff]  ;;  %v820_v28 = vld [vmem:[#allocation2 + $0x28] sm:$0xff] }
  0x1d   :  { %v831_v29 = vld [vmem:[#allocation5] sm:$0xff]  ;;  %v849_v30 = vld [vmem:[#allocation8 + $0x10] sm:$0xff]  ;;  %v848_v31 = vld [vmem:[#allocation8 + $0x8] sm:$0xff] }
  0x1e   :  { %516 = vmatpush.bf16.msra.mxu2 %v845_v16  ;;  %v847_v32 = vld [vmem:[#allocation8] sm:$0xff]  ;;  %v832_v33 = vld [vmem:[#allocation5 + $0x8] sm:$0xff]  ;;  %v833_v34 = vld [vmem:[#allocation5 + $0x10] sm:$0xff] }
  0x1f   :  { %371 = vmatpush.bf16.msra.mxu1 %v853_v17  ;;  %v834_v39 = vld [vmem:[#allocation5 + $0x18] sm:$0xff]  ;;  %v835_v46 = vld [vmem:[#allocation5 + $0x20] sm:$0xff]  ;;  %v836_v52 = vld [vmem:[#allocation5 + $0x28] sm:$0xff] }
  0x20   :  { %215 = vmatpush.bf16.msra.mxu0 %v827_v3  ;;  %905 = vmatpush.bf16.msra.mxu3 %v827_v3  ;;  %v837_v53 = vld [vmem:[#allocation5 + $0x30] sm:$0xff]  ;;  %v838_v57 = vld [vmem:[#allocation5 + $0x38] sm:$0xff] }
  0x22   :  { %517 = vmatpush.bf16.msra.mxu2 %v844_v18 }
  0x23   :  { %372 = vmatpush.bf16.msra.mxu1 %v852_v19 }
  0x24   :  { %216 = vmatpush.bf16.msra.mxu0 %v826_v4  ;;  %906 = vmatpush.bf16.msra.mxu3 %v826_v4 }
  0x26   :  { %518 = vmatpush.bf16.msra.mxu2 %v843_v20 }
  0x27   :  { %373 = vmatpush.bf16.msra.mxu1 %v851_v21 }
  0x28   :  { %217 = vmatpush.bf16.msra.mxu0 %v825_v5  ;;  %907 = vmatpush.bf16.msra.mxu3 %v825_v5  ;;  %v1126_v5 = vld [vmem:[%s1154_s4] ss:$0 sm:$0xff]  ;;  %s1068_s4 = smov [#allocation10]  }
  0x29   :  { %s636_s13 = sshll.u32 %s1068_s4, 4  ;;  %s637_s13 = int_to_ptr.vmem [resolvable:$true] %s636_s13 }
  0x2a   :  { %519 = vmatpush.bf16.msra.mxu2 %v842_v23 }
  0x2b   :  { %374 = vmatpush.bf16.msra.mxu1 %v850_v24 }
  0x2c   :  { %218 = vmatpush.bf16.msra.mxu0 %v824_v6  ;;  %908 = vmatpush.bf16.msra.mxu3 %v824_v6 }
  0x2e   :  { %520 = vmatpush.bf16.msra.mxu2 %v841_v25 }
  0x2f   :  { %375 = vmatpush.bf16.msra.mxu1 %v849_v30 }
  0x30   :  { %219 = vmatpush.bf16.msra.mxu0 %v823_v7  ;;  %909 = vmatpush.bf16.msra.mxu3 %v823_v7 }
  0x32   :  { %521 = vmatpush.bf16.msra.mxu2 %v840_v26 }
  0x33   :  { %220 = vmatmul.bf16.vlgmr.msra.gmra.mxu0 %v815_v8  ;;  %250 = vmatmul.bf16.vlgmr.msra.gmra.mxu3 %v821_v9 }
  0x34   :  { %910 = vmatpush.bf16.msrb.mxu3 %v854_v15  ;;  %376 = vmatpush.bf16.msra.mxu1 %v848_v31 }
  0x36   :  { %522 = vmatpush.bf16.msra.mxu2 %v839_v27 }
  0x38   :  { %911 = vmatpush.bf16.msrb.mxu3 %v853_v17  ;;  %377 = vmatpush.bf16.msra.mxu1 %v847_v32 }
  0x39   :  { %523 = vmatmul.bf16.vlgmr.msra.gmra.mxu2 %v831_v29 }
  0x3c   :  { %912 = vmatpush.bf16.msrb.mxu3 %v852_v19 }
  0x40   :  { %913 = vmatpush.bf16.msrb.mxu3 %v851_v21 }
  0x43   :  { %225 = vmatmul.bf16.gmra.mxu0 %v816_v10  ;;  %255 = vmatmul.bf16.gmra.mxu3 %v822_v11 }
  0x44   :  { %914 = vmatpush.bf16.msrb.mxu3 %v850_v24 }
  0x48   :  { %915 = vmatpush.bf16.msrb.mxu3 %v849_v30 }
  0x49   :  { %528 = vmatmul.bf16.gmra.mxu2 %v832_v33 }
  0x4c   :  { %916 = vmatpush.bf16.msrb.mxu3 %v848_v31 }
  0x50   :  { %917 = vmatpush.bf16.msrb.mxu3 %v847_v32 }
  0x53   :  { %230 = vmatmul.bf16.gmra.mxu0 %v817_v12 }
  0x54   :  { %918 = vmatpush.bf16.msra.mxu3 %v846_v14 }
  0x58   :  { %919 = vmatpush.bf16.msra.mxu3 %v845_v16 }
  0x59   :  { %533 = vmatmul.bf16.gmra.mxu2 %v833_v34 }
  0x5c   :  { %920 = vmatpush.bf16.msra.mxu3 %v844_v18 }
  0x60   :  { %921 = vmatpush.bf16.msra.mxu3 %v843_v20 }
  0x63   :  { %235 = vmatmul.bf16.gmra.mxu0 %v818_v13 }
  0x64   :  { %922 = vmatpush.bf16.msra.mxu3 %v842_v23 }
  0x68   :  { %923 = vmatpush.bf16.msra.mxu3 %v841_v25 }
  0x69   :  { %538 = vmatmul.bf16.gmra.mxu2 %v834_v39 }
  0x6c   :  { %924 = vmatpush.bf16.msra.mxu3 %v840_v26 }
  0x70   :  { %925 = vmatpush.bf16.msra.mxu3 %v839_v27 }
  0x73   :  { %240 = vmatmul.bf16.gmra.mxu0 %v819_v22 }
  0x79   :  { %543 = vmatmul.bf16.gmra.mxu2 %v835_v46 }
  0x83   :  { %245 = vmatmul.bf16.gmra.mxu0 %v820_v28 }
  0x89   :  { %548 = vmatmul.bf16.gmra.mxu2 %v836_v52 }
  0xb0   :  { %v221_v35 = vpop.f32.mrf.mxu0 }
  0xb6   :  { %v251_v36 = vpop.f32.mrf.mxu3 }
  0xb8   :  { %v223_v37 = vpop.f32.mrf.mxu0 }
  0xb9   :  { %v298_v38 = vpack.c.bf16 %v223_v37, %v221_v35 }
  0xbb   :  { %378 = vmatmul.bf16.vlgmr.msra.gmra.mxu1 %v298_v38 }
  0xbc   :  { %v524_v0 = vpop.f32.mrf.mxu2 }
  0xbe   :  { %v253_v40 = vpop.f32.mrf.mxu3 }
  0xbf   :  { %v304_v41 = vpack.c.bf16 %v253_v40, %v251_v36 }
  0xc0   :  { %v226_v42 = vpop.f32.mrf.mxu0 }
  0xc1   :  { %408 = vmatmul.bf16.vlgmr.msrb.gmra.mxu3 %v304_v41 }
  0xc4   :  { %v526_v1 = vpop.f32.mrf.mxu2 }
  0xc6   :  { %v256_v43 = vpop.f32.mrf.mxu3 }
  0xc8   :  { %v228_v44 = vpop.f32.mrf.mxu0 }
  0xc9   :  { %v299_v45 = vpack.c.bf16 %v228_v44, %v226_v42 }
  0xcb   :  { %383 = vmatmul.bf16.gmra.mxu1 %v299_v45 }
  0xcc   :  { %v529_v2 = vpop.f32.mrf.mxu2 }
  0xce   :  { %v258_v47 = vpop.f32.mrf.mxu3 }
  0xcf   :  { %v305_v48 = vpack.c.bf16 %v258_v47, %v256_v43 }
  0xd0   :  { %v231_v49 = vpop.f32.mrf.mxu0 }
  0xd1   :  { %413 = vmatmul.bf16.gmra.mxu3 %v305_v48 }
  0xd4   :  { %v531_v7 = vpop.f32.mrf.mxu2 }
  0xd8   :  { %v233_v50 = vpop.f32.mrf.mxu0 }
  0xd9   :  { %v300_v51 = vpack.c.bf16 %v233_v50, %v231_v49 }
  0xdb   :  { %388 = vmatmul.bf16.gmra.mxu1 %v300_v51 }
  0xdc   :  { %v534_v16 = vpop.f32.mrf.mxu2 }
  0xe0   :  { %v236_v54 = vpop.f32.mrf.mxu0 }
  0xe1   :  { %553 = vmatmul.bf16.vlgmr.msra.gmra.mxu3 %v837_v53 }
  0xe4   :  { %v536_v24 = vpop.f32.mrf.mxu2 }
  0xe8   :  { %v238_v55 = vpop.f32.mrf.mxu0 }
  0xe9   :  { %v301_v56 = vpack.c.bf16 %v238_v55, %v236_v54 }
  0xeb   :  { %393 = vmatmul.bf16.gmra.mxu1 %v301_v56 }
  0xec   :  { %v539_v31 = vpop.f32.mrf.mxu2 }
  0xf0   :  { %v241_v58 = vpop.f32.mrf.mxu0 }
  0xf1   :  { %558 = vmatmul.bf16.gmra.mxu3 %v838_v57 }
  0xf4   :  { %v541_v41 = vpop.f32.mrf.mxu2 }
  0xf8   :  { %v243_v59 = vpop.f32.mrf.mxu0 }
  0xf9   :  { %v302_v60 = vpack.c.bf16 %v243_v59, %v241_v58 }
  0xfb   :  { %398 = vmatmul.bf16.gmra.mxu1 %v302_v60 }
  0xfc   :  { %v544_v53 = vpop.f32.mrf.mxu2 }
 0x100   :  { %v246_v61 = vpop.f32.mrf.mxu0 }
 0x108   :  { %v248_v62 = vpop.f32.mrf.mxu0 }
 0x109   :  { %v303_v63 = vpack.c.bf16 %v248_v62, %v246_v61  ;;  %v546_v62 = vpop.f32.mrf.mxu2 }
 0x10b   :  { %403 = vmatmul.bf16.gmra.mxu1 %v303_v63 }
 0x138   :  { %v379_v3 = vpop.f32.mrf.mxu1 }
 0x139   :  { %v525_v4 = vadd.f32 %v524_v0, %v379_v3 }
 0x13b   :  { %v568_v8 = vadd.f32 %v1126_v5, %v525_v4 }
 0x13d   :  { %v584_v12 = vmax.f32 %v568_v8, 0.0 }
 0x140   :  { %v381_v6 = vpop.f32.mrf.mxu1 }
 0x141   :  { %v527_v9 = vadd.f32 %v526_v1, %v381_v6 }
 0x143   :  { %v569_v10 = vadd.f32 %v1126_v5, %v527_v9 }
 0x144   :  { %v409_v11 = vpop.f32.mrf.mxu3 }
 0x145   :  { %v585_v13 = vmax.f32 %v569_v10, 0.0 }
 0x147   :  { %v858_v14 = vpack.c.bf16 %v585_v13, %v584_v12 }
 0x148   :  { %v384_v15 = vpop.f32.mrf.mxu1 }
 0x149   :  { %859 = vst [vmem:[#allocation10] sm:$0xff] %v858_v14   ;;  %v530_v18 = vadd.f32 %v529_v2, %v384_v15  ;;  %v549_v14 = vpop.f32.mrf.mxu2 }
 0x14b   :  { %v570_v20 = vadd.f32 %v1126_v5, %v530_v18 }
 0x14c   :  { %v411_v17 = vpop.f32.mrf.mxu3 }
 0x14d   :  { %v586_v25 = vmax.f32 %v570_v20, 0.0 }
 0x150   :  { %v386_v19 = vpop.f32.mrf.mxu1 }
 0x151   :  { %v532_v21 = vadd.f32 %v531_v7, %v386_v19  ;;  %v551_v18 = vpop.f32.mrf.mxu2 }
 0x153   :  { %v571_v22 = vadd.f32 %v1126_v5, %v532_v21 }
 0x154   :  { %v414_v23 = vpop.f32.mrf.mxu3 }
 0x155   :  { %v587_v26 = vmax.f32 %v571_v22, 0.0 }
 0x157   :  { %v863_v27 = vpack.c.bf16 %v587_v26, %v586_v25 }
 0x158   :  { %v389_v28 = vpop.f32.mrf.mxu1 }
 0x159   :  { %895 = vst [vmem:[#allocation10 + $0x8] sm:$0xff] %v863_v27   ;;  %v535_v30 = vadd.f32 %v534_v16, %v389_v28 }
 0x15b   :  { %v572_v33 = vadd.f32 %v1126_v5, %v535_v30 }
 0x15c   :  { %v416_v29 = vpop.f32.mrf.mxu3 }
 0x15d   :  { %v588_v37 = vmax.f32 %v572_v33, 0.0 }
 0x160   :  { %v391_v32 = vpop.f32.mrf.mxu1 }
 0x161   :  { %v537_v34 = vadd.f32 %v536_v24, %v391_v32 }
 0x163   :  { %v573_v35 = vadd.f32 %v1126_v5, %v537_v34 }
 0x164   :  { %v554_v36 = vpop.f32.mrf.mxu3 }
 0x165   :  { %v589_v38 = vmax.f32 %v573_v35, 0.0  ;;  %v555_v42 = vadd.f32 %v554_v36, %v409_v11 }
 0x167   :  { %v868_v39 = vpack.c.bf16 %v589_v38, %v588_v37  ;;  %v580_v44 = vadd.f32 %v1126_v5, %v555_v42 }
 0x168   :  { %v394_v40 = vpop.f32.mrf.mxu1 }
 0x169   :  { %896 = vst [vmem:[#allocation10 + $0x10] sm:$0xff] %v868_v39   ;;  %v540_v45 = vadd.f32 %v539_v31, %v394_v40  ;;  %v596_v49 = vmax.f32 %v580_v44, 0.0 }
 0x16b   :  { %v574_v50 = vadd.f32 %v1126_v5, %v540_v45 }
 0x16c   :  { %v556_v43 = vpop.f32.mrf.mxu3 }
 0x16d   :  { %v557_v46 = vadd.f32 %v556_v43, %v411_v17  ;;  %v590_v57 = vmax.f32 %v574_v50, 0.0 }
 0x16f   :  { %v581_v47 = vadd.f32 %v1126_v5, %v557_v46 }
 0x170   :  { %v396_v48 = vpop.f32.mrf.mxu1 }
 0x171   :  { %v597_v51 = vmax.f32 %v581_v47, 0.0  ;;  %v542_v52 = vadd.f32 %v541_v41, %v396_v48 }
 0x173   :  { %v888_v54 = vpack.c.bf16 %v597_v51, %v596_v49  ;;  %v575_v55 = vadd.f32 %v1126_v5, %v542_v52 }
 0x174   :  { %v559_v56 = vpop.f32.mrf.mxu3 }
 0x175   :  { %900 = vst [vmem:[#allocation10 + $0x30] sm:$0xff] %v888_v54   ;;  %v591_v58 = vmax.f32 %v575_v55, 0.0  ;;  %v560_v61 = vadd.f32 %v559_v56, %v414_v23 }
 0x177   :  { %v873_v59 = vpack.c.bf16 %v591_v58, %v590_v57  ;;  %v582_v0 = vadd.f32 %v1126_v5, %v560_v61 }
 0x178   :  { %v399_v60 = vpop.f32.mrf.mxu1 }
 0x179   :  { %897 = vst [vmem:[#allocation10 + $0x18] sm:$0xff] %v873_v59   ;;  %v545_v1 = vadd.f32 %v544_v53, %v399_v60  ;;  %v598_v6 = vmax.f32 %v582_v0, 0.0 }
 0x17b   :  { %v576_v7 = vadd.f32 %v1126_v5, %v545_v1 }
 0x17c   :  { %v561_v63 = vpop.f32.mrf.mxu3 }
 0x17d   :  { %v562_v2 = vadd.f32 %v561_v63, %v416_v29  ;;  %v592_v12 = vmax.f32 %v576_v7, 0.0 }
 0x17f   :  { %v583_v3 = vadd.f32 %v1126_v5, %v562_v2 }
 0x180   :  { %v401_v4 = vpop.f32.mrf.mxu1 }
 0x181   :  { %v599_v8 = vmax.f32 %v583_v3, 0.0  ;;  %v547_v9 = vadd.f32 %v546_v62, %v401_v4 }
 0x183   :  { %v893_v10 = vpack.c.bf16 %v599_v8, %v598_v6  ;;  %v577_v11 = vadd.f32 %v1126_v5, %v547_v9 }
 0x185   :  { %901 = vst [vmem:[#allocation10 + $0x38] sm:$0xff] %v893_v10   ;;  %v593_v13 = vmax.f32 %v577_v11, 0.0 }
 0x187   :  { %v878_v15 = vpack.c.bf16 %v593_v13, %v592_v12 }
 0x188   :  { %v404_v16 = vpop.f32.mrf.mxu1 }
 0x189   :  { %898 = vst [vmem:[#allocation10 + $0x20] sm:$0xff] %v878_v15   ;;  %v550_v17 = vadd.f32 %v549_v14, %v404_v16 }
 0x18b   :  { %v578_v20 = vadd.f32 %v1126_v5, %v550_v17 }
 0x18d   :  { %v594_v23 = vmax.f32 %v578_v20, 0.0 }
 0x190   :  { %v406_v19 = vpop.f32.mrf.mxu1 }
 0x191   :  { %v552_v21 = vadd.f32 %v551_v18, %v406_v19 }
 0x193   :  { %v579_v22 = vadd.f32 %v1126_v5, %v552_v21 }
 0x195   :  { %v595_v24 = vmax.f32 %v579_v22, 0.0 }
 0x197   :  { %v883_v25 = vpack.c.bf16 %v595_v24, %v594_v23 }
 0x199   :  { %899 = vst [vmem:[#allocation10 + $0x28] sm:$0xff] %v883_v25  }
 0x19a   :  { %644 = dma.vmem_to_hbm [thread:$0]  %s637_s13, 1024, %s639_s16, [#allocation4], %s1063_s26, %s1063_s26, %s1064_s27  }
 0x19b   :  { %1060 = dma.done.wait [#allocation4], 1024  }
 0x19c   :  { %1061 = vsyncadd [#allocation4], 4294966272 }
 0x19d   :  { %649 = vsyncpa [#allocation3], 1 }
 0x19e   :  { %650 = vsyncpa [#allocation6], 1 }
 0x19f   :  { %651 = vsyncpa [#allocation9], 1 }
 0x1a0   :  { %652 = vsyncpa [#allocation4], 1 }

</bundles_post_ra>
